<compile_context>
chip_gen: v7x
topology: tpu7x:2x2x1
jax: 0.10.0
libtpu: 0.0.40
codegen_flags: <defaults>
</compile_context>

<pallas_src>
import numpy as np
import jax
import jax.numpy as jnp
from jax.experimental import pallas as pl
from jax.experimental.pallas import tpu as pltpu


# --------------------------------------------------------------------------- filters

def _gaussian_1d(scale):
    """1-D normalized Gaussian taps + pad size, exactly as AntiAliasInterpolation2d."""
    sigma = (1.0 / scale - 1.0) / 2.0
    ksize = 2 * round(sigma * 4) + 1
    ka = ksize // 2
    mean = (ksize - 1) / 2.0
    grid = np.arange(ksize, dtype=np.float32)
    g1 = np.exp(-((grid - mean) ** 2) / (2.0 * np.float32(sigma) ** 2)).astype(np.float32)
    g1 = (g1 / g1.sum()).astype(np.float32)   # separable: outer(g1, g1) == k2 / k2.sum()
    return g1, ka


def _gaussian_kernel_2d(scale):
    """Full 2-D kernel (reference only), matching the PyTorch buffer `weight`."""
    sigma = (1.0 / scale - 1.0) / 2.0
    ksize = 2 * round(sigma * 4) + 1
    ka = ksize // 2
    kb = ka - 1 if ksize % 2 == 0 else ka
    mean = (ksize - 1) / 2.0
    grid = np.arange(ksize, dtype=np.float32)
    g1 = np.exp(-((grid - mean) ** 2) / (2.0 * np.float32(sigma) ** 2)).astype(np.float32)
    k2 = np.outer(g1, g1).astype(np.float32)
    return k2 / k2.sum(), ka, kb


def _toeplitz(g1, ka, n_in, stride):
    """Banded Toeplitz T (n_in, n_out): T[i, c] = g1[k] where i = c*stride + k - ka.

    A single matmul with T performs: zero-pad by ka, 'valid' 1-D correlation with g1,
    and ::stride subsampling (taps that fall outside [0, n_in) are simply dropped,
    which is exactly zero padding)."""
    n_out = (n_in + stride - 1) // stride          # == len(range(0, n_in, stride))
    K = g1.shape[0]
    T = np.zeros((n_in, n_out), dtype=np.float32)
    for c in range(n_out):
        for k in range(K):
            i = c * stride + k - ka
            if 0 <= i < n_in:
                T[i, c] = g1[k]
    return T


# --------------------------------------------------------------------------- kernel

def _blur_ds_kernel(x_ref, th_ref, tw_ref, o_ref):
    """One image plane: out = T_h @ x @ T_w  (two MXU matmuls, f32 accumulate)."""
    t = jnp.dot(x_ref[...], tw_ref[...], preferred_element_type=jnp.float32)   # (H, Wo)
    y = jnp.dot(th_ref[...], t, preferred_element_type=jnp.float32)            # (Ho, Wo)
    o_ref[...] = y.astype(o_ref.dtype)


def antialias_downsample(x, scale):
    """Equivalent of AntiAliasInterpolation2d(num_channels, scale)(x) for NCHW x."""
    if scale == 1 or scale == 1.0:
        return x
    B, C, H, W = x.shape
    s = int(1.0 / scale)
    g1, ka = _gaussian_1d(scale)

    Th = jnp.asarray(_toeplitz(g1, ka, H, s).T)    # (Ho, H)
    Tw = jnp.asarray(_toeplitz(g1, ka, W, s))      # (W, Wo)
    Ho, Wo = Th.shape[0], Tw.shape[1]

    N = B * C                                      # one Gaussian per plane (depthwise)
    xf = x.reshape(N, H, W)                        # free reshape (contiguous)

    itemsize = jnp.dtype(x.dtype).itemsize
    cost = pl.CostEstimate(
        flops=int(2 * N * (H * W * Wo + Ho * H * Wo)),
        transcendentals=0,
        bytes_accessed=int(itemsize * N * (H * W + Ho * Wo) + 4 * (Ho * H + W * Wo)),
    )

    out = pl.pallas_call(
        _blur_ds_kernel,
        out_shape=jax.ShapeDtypeStruct((N, Ho, Wo), x.dtype),
        grid=(N,),
        in_specs=[
            pl.BlockSpec((pl.Squeezed(), H, W), lambda n: (n, 0, 0)),  # one plane / step
            pl.BlockSpec((Ho, H), lambda n: (0, 0)),                   # tiny, stays resident
            pl.BlockSpec((W, Wo), lambda n: (0, 0)),
        ],
        out_specs=pl.BlockSpec((pl.Squeezed(), Ho, Wo), lambda n: (n, 0, 0)),
        compiler_params=pltpu.CompilerParams(dimension_semantics=("parallel",)),
        cost_estimate=cost,
    )(xf, Th, Tw)

    return out.reshape(B, C, Ho, Wo)


class ImagePyramide:
    """JAX/Pallas port of modules.model_dataparallel.ImagePyramide (forward only)."""

    def __init__(self, scales, num_channels):
        self.scales = list(scales)
        self.num_channels = num_channels  # filter is identical per channel (depthwise)

    def __call__(self, x):
        out_dict = {}
        for scale in self.scales:
            # matches 'prediction_' + str(scale).replace('.', '-').replace('-', '.')
            key = 'prediction_' + str(scale)
            out_dict[key] = antialias_downsample(x, scale)
        return out_dict


# --------------------------------------------------------------------------- reference

def _reference_downsample(x, scale):
    """Plain-JAX reference: pad -> full K*K depthwise conv -> strided slice (original math)."""
    if scale == 1 or scale == 1.0:
        return x
    B, C, H, W = x.shape
    weights, ka, kb = _gaussian_kernel_2d(scale)
    K = weights.shape[0]
    xpad = jnp.pad(x, ((0, 0), (0, 0), (ka, kb), (ka, kb))).astype(jnp.float32)
    acc = jnp.zeros((B, C, H, W), jnp.float32)
    for kh in range(K):
        for kw in range(K):
            acc = acc + float(weights[kh, kw]) * xpad[:, :, kh:kh + H, kw:kw + W]
    s = int(1.0 / scale)
    return acc.astype(x.dtype)[:, :, ::s, ::s]


if __name__ == "__main__":
    key = jax.random.PRNGKey(0)
    B, C, H, W = 2, 4, 16, 16           # NCHW, like PyTorch
    scales = [1, 0.5, 0.25]
    x = jax.random.normal(key, (B, C, H, W), dtype=jnp.float32)

    pyramid = ImagePyramide(scales, num_channels=C)
    out = pyramid(x)
    out = jax.tree_util.tree_map(jax.block_until_ready, out)

    # sanity check against the plain-JAX (non-separable, unfused) reference
    for scale in scales:
        k = 'prediction_' + str(scale)
        ref = _reference_downsample(x, scale)
        assert out[k].shape == ref.shape, (out[k].shape, ref.shape)
        np.testing.assert_allclose(np.asarray(out[k]), np.asarray(ref), atol=1e-5, rtol=1e-5)

    print("KERNEL_OK")
</pallas_src>

<mosaic_0001>
module attributes {stable_mosaic.version = 11 : i64} {
  func.func @_blur_ds_kernel(%arg0: i32, %arg1: memref<1x16x16xf32, #tpu.memory_space<vmem>>, %arg2: memref<8x16xf32, #tpu.memory_space<vmem>>, %arg3: memref<16x8xf32, #tpu.memory_space<vmem>>, %arg4: memref<1x8x8xf32, #tpu.memory_space<vmem>>) attributes {dimension_semantics = [#tpu.dimension_semantics<parallel>], iteration_bounds = array<i64: 8>, scalar_prefetch = 0 : i64, scratch_operands = 0 : i64, tpu.core_type = #tpu.core_type<tc>, window_params = [{transform_indices = @transform_0, window_bounds = array<i64: 1, 16, 16>}, {pipeline_mode = #tpu.pipeline_mode<synchronous>, transform_indices = @transform_1, window_bounds = array<i64: 8, 16>}, {pipeline_mode = #tpu.pipeline_mode<synchronous>, transform_indices = @transform_2, window_bounds = array<i64: 16, 8>}, {transform_indices = @transform_3, window_bounds = array<i64: 1, 8, 8>}]} {
    %c0 = arith.constant 0 : index
    %c0_0 = arith.constant 0 : index
    %c0_1 = arith.constant 0 : index
    %0 = vector.load %arg1[%c0, %c0_0, %c0_1] : memref<1x16x16xf32, #tpu.memory_space<vmem>>, vector<1x16x16xf32>
    %1 = vector.shape_cast %0 : vector<1x16x16xf32> to vector<16x16xf32>
    %c0_2 = arith.constant 0 : index
    %c0_3 = arith.constant 0 : index
    %2 = vector.load %arg3[%c0_2, %c0_3] : memref<16x8xf32, #tpu.memory_space<vmem>>, vector<16x8xf32>
    %cst = arith.constant dense<0.000000e+00> : vector<16x8xf32>
    %3 = tpu.matmul %1, %2, %cst {dimension_numbers = #tpu.dot_dimension_numbers<[1], [0], [0], [1], [0, 0, 1, 1], [], []>} : vector<16x16xf32>, vector<16x8xf32>, vector<16x8xf32> -> vector<16x8xf32>
    %c0_4 = arith.constant 0 : index
    %c0_5 = arith.constant 0 : index
    %4 = vector.load %arg2[%c0_4, %c0_5] : memref<8x16xf32, #tpu.memory_space<vmem>>, vector<8x16xf32>
    %cst_6 = arith.constant dense<0.000000e+00> : vector<8x8xf32>
    %5 = tpu.matmul %4, %3, %cst_6 {dimension_numbers = #tpu.dot_dimension_numbers<[1], [0], [0], [1], [0, 0, 1, 1], [], []>} : vector<8x16xf32>, vector<16x8xf32>, vector<8x8xf32> -> vector<8x8xf32>
    %c0_7 = arith.constant 0 : index
    %c0_8 = arith.constant 0 : index
    %c0_9 = arith.constant 0 : index
    %6 = vector.load %arg4[%c0_7, %c0_8, %c0_9] : memref<1x8x8xf32, #tpu.memory_space<vmem>>, vector<1x8x8xf32>
    %7 = vector.shape_cast %6 : vector<1x8x8xf32> to vector<8x8xf32>
    %8 = vector.shape_cast %5 : vector<8x8xf32> to vector<1x8x8xf32>
    tpu.vector_store %arg4[%c0_7, %c0_8, %c0_9], %8 {strides = array<i32>} : memref<1x8x8xf32, #tpu.memory_space<vmem>>, vector<1x8x8xf32>,
    return
  }
  func.func @transform_0(%arg0: i32) -> (i32, i32, i32) {
    %c0_i32 = arith.constant 0 : i32
    %c0_i32_0 = arith.constant 0 : i32
    %c0_i32_1 = arith.constant 0 : i32
    return %arg0, %c0_i32, %c0_i32_0 : i32, i32, i32
  }
  func.func @transform_1(%arg0: i32) -> (i32, i32) {
    %c0_i32 = arith.constant 0 : i32
    %c0_i32_0 = arith.constant 0 : i32
    %c0_i32_1 = arith.constant 0 : i32
    return %c0_i32, %c0_i32_0 : i32, i32
  }
  func.func @transform_2(%arg0: i32) -> (i32, i32) {
    %c0_i32 = arith.constant 0 : i32
    %c0_i32_0 = arith.constant 0 : i32
    %c0_i32_1 = arith.constant 0 : i32
    return %c0_i32, %c0_i32_0 : i32, i32
  }
  func.func @transform_3(%arg0: i32) -> (i32, i32, i32) {
    %c0_i32 = arith.constant 0 : i32
    %c0_i32_0 = arith.constant 0 : i32
    %c0_i32_1 = arith.constant 0 : i32
    return %arg0, %c0_i32, %c0_i32_0 : i32, i32, i32
  }
}

</mosaic_0001>

<bundles_post_ra>
// kernel: tpu_custom_call.1
= control target key start
LH: loop header
LB: loop body
LE: loop exit
PB: predicated region body
PF: predicated region fallthrough
CT: control target
= control target key end

     0   :  { %8 = vsyncpa [#allocation3], 0  ;;  %s827_s0 = inlined_call_operand.hbm [shape: f32[8,16,16], index: 0, kind: input, shape index: {}]   ;;  %s828_s1 = inlined_call_operand.vmem [shape: f32[8,16], index: 1, kind: input, shape index: {}]   ;;  %s829_s2 = inlined_call_operand.vmem [shape: f32[16,8], index: 2, kind: input, shape index: {}]   ;;  %s830_s3 = inlined_call_operand.hbm [shape: f32[8,8,8], index: 3, kind: output, shape index: {}]  }
   0x1   :  { %10 = vsyncpa [#allocation3 + $0x1], 0 }
   0x2   :  { %11 = vsyncpa [#allocation4], 0 }
   0x3   :  { %13 = vsyncpa [#allocation4 + $0x1], 0  ;;  %s656_s12 = smov 0   ;;  %s658_s13 = smov 0  }
   0x4   :  { %s660_s14 = smov 0   ;;  %s662_s15 = smov 0  }
   0x5 LB: > { %s677_s16 = sadd.s32 4294967295, %s627_s15   ;;  %s435_s17 = sadd.s32 4294967294, %s627_s15   ;;  %s627_s15 = sphi %s662_s15, %s842_s15   ;;  %s623_s14 = sphi %s660_s14, %s841_s14   ;;  %s619_s13 = sphi %s658_s13, %s840_s13   ;;  %s615_s12 = sphi %s656_s12, %s839_s12  }
   0x6   : > { %s681_s18 = sadd.s32 1, %s627_s15   ;;  %s26_s19 = sadd.s32 1, %s623_s14 }
   0x7   : > { %s23_s20 = ssub.s32 %s627_s15, %s681_s18  ;;  %p33_p0 = scmp.ne.s32.totalorder %s623_s14, %s619_s13 }
   0x8   : > { %p24_p1 = scmp.eq.s32.totalorder %s23_s20, 0  ;;  %p34_p2 = scmp.eq.s32.totalorder %s627_s15, 0 }
   0x9   : > { %p39_p3 = scmp.ne.s32.totalorder %s619_s13, %s615_s12  ;;  %p40_p4 = scmp.eq.s32.totalorder %s677_s16, 0 }
   0xa   : > { %s693_s21 = scalar_select %p24_p1, %s623_s14, %s26_s19  }
   0xb   : > { %p695_p5 = por %p34_p2, %p33_p0  ;;  %p699_p6 = por %p40_p4, %p39_p3 }
   0xc   : > { %p105_p7 = scmp.eq.s32.totalorder %s677_s16, 7  ;;  %p111_p8 = scmp.eq.s32.totalorder %s435_s17, 7 }
   0xd   : > { %p492_p9 = scmp.lt.s32.totalorder %s627_s15, 8  ;;  %s137_s26 = sand.u32 1, %s623_s14  }
   0xe   : > { %p705_p10 = por %p105_p7, %p33_p0  ;;  %p709_p11 = por %p111_p8, %p39_p3 }
   0xf   : > { %s451_s27 = sshll.u32 %s627_s15, 8  ;;  %s438_s28 = sshll.u32 %s137_s26, 4 }
  0x10   : > { %s834_s24 = scalar_select %p705_p10, 1, 0 }
  0x11   : > { %s835_s25 = scalar_select %p709_p11, 1, 0 }
  0x12   : > { %s718_s4 = scalar_lea.hbm %s827_s0, %s451_s27  ;;  %s141_s5 = scalar_lea.vmem [#allocation2], %s438_s28 }
  0x13   : > { %s148_s6 = sshll.u32 %s141_s5, 4  ;;  %p722_p12 = pnand %p492_p9, %p695_p5  ;;  %s726_s6 = int_to_ptr.vmem [resolvable:$true] %s148_s6 }
  0x14   : > { %s728_s8 = scalar_lea.sflag [#allocation3], %s137_s26  ;;  %s531_s9 = scalar_lea.hbm %s718_s4, 256 }
  0x15   : > { %p532_p13 = scmp.ne.s32.totalorder %s718_s4, %s531_s9  ;;  %p533_p0 = pneg %p722_p12 }
  0x16   : > { %s536_s17 = scalar_lea.hbm %s827_s0, 2048  ;;  %p537_p3 = scmp.lt.u32.totalorder %s718_s4, %s827_s0 }
  0x17   : > { %p534_p1 = pnand %p533_p0, %p532_p13  ;;  %p538_p4 = scmp.lt.u32.totalorder %s536_s17, %s531_s9 }
  0x18   : > { %p540_p7 = scmp.lt.u32.totalorder %s531_s9, %s718_s4 }
  0x19   : > { %p535_p2 = pneg %p534_p1  ;;  %p539_p5 = por %p538_p4, %p537_p3 }
  0x1b   : > { %p541_p8 = por %p540_p7, %p539_p5 }
  0x1d   : > { %p542_p9 = pnand %p541_p8, %p535_p2 }
  0x1f   : > { %545 = shalt.err (!%p542_p9)
}
  0x20   : > { %s546_s22 = scalar_lea.vmem %s726_s6, 256  ;;  %s629_s26 = smov [#allocation2]  }
  0x21   : > { %p547_p13 = scmp.ne.s32.totalorder %s726_s6, %s546_s22  ;;  %s551_s27 = sshll.u32 %s629_s26, 4  ;;  %s552_s27 = int_to_ptr.vmem [resolvable:$false] %s551_s27 }
  0x22   : > { %s553_s28 = scalar_lea.vmem %s552_s27, 512  ;;  %p554_p10 = scmp.lt.s32.totalorder %s726_s6, %s552_s27 }
  0x23   : > { %p549_p1 = pnand %p547_p13, %p533_p0  ;;  %p555_p3 = scmp.lt.s32.totalorder %s553_s28, %s546_s22 }
  0x25   : > { %p550_p11 = pneg %p549_p1  ;;  %p556_p4 = por %p555_p3, %p554_p10 }
  0x27   : > { %p557_p5 = pnand %p556_p4, %p550_p11 }
  0x29   : > { %560 = shalt.err (!%p557_p5)
}
  0x2a   : > { %s630_s29 = smov 128   ;;  %s631_s30 = smov 8  }
  0x2b   : > { %487 = dma.hbm_to_vmem [thread:$0]  (!%p722_p12), %s718_s4, 256, %s726_s6, %s728_s8, %s630_s29, %s630_s29, %s631_s30  }
  0x2c   : > { %p441_p0 = scmp.ge.s32.totalorder %s627_s15, 1  ;;  %p156_p2 = scmp.lt.s32.totalorder %s627_s15, 9 }
  0x2e   : > { %p157_p7 = pnand %p441_p0, %p156_p2 }
  0x2f   : > { %s759_s5 = sand.u32 (!%p157_p7), 1, %s619_s13  }
  0x30   : > { %160 = sbr.rel (%p157_p7) target bundleno = 507 (0x1fb), region = 32  ;;  %s442_s9 = sshll.u32 (!%p157_p7), %s759_s5, 4 }
  0x31   : > { %s163_s10 = scalar_lea.sflag (!%p157_p7), [#allocation3], %s759_s5  ;;  %s166_s11 = scalar_lea.vmem (!%p157_p7), [#allocation2], %s442_s9 }
  0x37   : > { %606 = dma.done.wait (%p699_p6), %s163_s10, 256  }
  0x38   : > { %608 = vsyncadd (%p699_p6), %s163_s10, 4294967040  ;;  %vm193_vm0 = vcmask 130048   ;;  %v191_v0 = vld [vmem:[%s829_s2] sm:$0xff]  ;;  %v192_v1 = vld [vmem:[%s829_s2 + $0x8] sm:$0xff]  ;;  %v632_v5 = vmov 0.0|0.0   ;;  %vm633_vm1 = vmmov 0  }
  0x39   : > { %v189_v2 = vld [vmem:[%s166_s11] sm:$0xff]  ;;  %v473_v3 = vpack.c.bf16 %v192_v1, %v191_v0  ;;  %v190_v4 = vld [vmem:[%s166_s11 + $0x8] sm:$0xff]  ;;  %477 = vmatprep.subr.bf16.mxu1 %v632_v5  ;;  %v634_v6 = vmov 0.0   ;;  %s443_s19 = sshll.u32 %s759_s5, 3  ;;  %s448_s20 = sshll.u32 %s677_s16, 7  ;;  %vm349_vm2 = vcmask 64512  }
  0x3a   : > { %463 = vmatprep.mubr.msk.f32.mxu0 %vm193_vm0, %v189_v2  ;;  %470 = vmatprep.mubr.msk.f32.mxu1 %vm633_vm1, %v634_v6  ;;  %v275_v10 = vld [vmem:[%s828_s1] sm:$0xff]  ;;  %s188_s22 = scalar_lea.vmem [#allocation5], %s443_s19  ;;  %s784_s29 = scalar_lea.hbm %s830_s3, %s448_s20 }
  0x3b   : > { %474 = vmatprep.subr.bf16.mxu0 %v473_v3  ;;  %s365_s26 = sshll.u32 %s188_s22, 4  ;;  %s352_s30 = scalar_lea.sflag [#allocation4], %s759_s5  ;;  %s786_s26 = int_to_ptr.vmem [resolvable:$true] %s365_s26 }
  0x3c   : > { %476 = vmatpush3.bf16.msra.mxu0 %v473_v3  ;;  %s561_s9 = scalar_lea.vmem %s786_s26, 128  ;;  %p837_p10 = scmp.ne.s32.totalorder %s834_s24, 0 }
  0x3d   : > { %p562_p6 = scmp.ne.s32.totalorder %s786_s26, %s561_s9  ;;  %s635_s16 = smov [#allocation5]  }
  0x3e   : > { %s565_s10 = sshll.u32 %s635_s16, 4  ;;  %s566_s10 = int_to_ptr.vmem [resolvable:$false] %s565_s10 }
  0x3f   : > { %464 = vmatmul.mubr.msk.f32.vlgmr.msra.gmra.mrb[0].mxu0 %vm193_vm0, %v190_v4  ;;  %p563_p11 = pnand %p562_p6, %p837_p10  ;;  %s567_s11 = scalar_lea.vmem %s566_s10, 256 }
  0x40   : > { %p568_p8 = scmp.lt.s32.totalorder %s786_s26, %s566_s10  ;;  %p569_p9 = scmp.lt.s32.totalorder %s567_s11, %s561_s9 }
  0x41   : > { %p564_p12 = pneg %p563_p11 }
  0x42   : > { %p570_p13 = por %p569_p9, %p568_p8 }
  0x44   : > { %p571_p1 = pnand %p570_p13, %p564_p12 }
 0x112   : > { %v465_v7 = vpop.f32.mrb[0].mxu0 }
 0x113   : > { %v266_v8 = vpop.f32.mrb[1].mxu0 }
 0x114   : > { %v478_v9 = vpack.c.bf16 %v465_v7, %v266_v8 }
 0x116   : > { %479 = vmatpush3.bf16.msra.mxu1 %v478_v9 }
 0x119   : > { %471 = vmatmul.mubr.msk.f32.vlgmr.msra.gmra.mrb[0].mxu1 %vm193_vm0, %v275_v10 }
 0x1ec   : > { %v345_v11 = vpop.f32.mrb[0].mxu1 }
 0x1ed   : > { %350 = vst.msk [vmem:[%s188_s22] sm:$0xff] %vm349_vm2, %v345_v11  ;;  %v472_v12 = vpop.f32.mrb[1].mxu1 }
 0x1ee   : > { %574 = shalt.err (!%p571_p1)
}
 0x1ef   : > { %s575_s5 = scalar_lea.hbm %s784_s29, 128  ;;  %s579_s7 = scalar_lea.hbm %s830_s3, 1024 }
 0x1f0   : > { %p576_p3 = scmp.ne.s32.totalorder %s784_s29, %s575_s5  ;;  %p580_p0 = scmp.lt.u32.totalorder %s784_s29, %s830_s3 }
 0x1f1   : > { %p581_p2 = scmp.lt.u32.totalorder %s579_s7, %s575_s5  ;;  %p583_p6 = scmp.lt.u32.totalorder %s575_s5, %s784_s29 }
 0x1f2   : > { %p577_p4 = pnand %p576_p3, %p837_p10 }
 0x1f3   : > { %p582_p7 = por %p581_p2, %p580_p0 }
 0x1f4   : > { %p578_p5 = pneg %p577_p4 }
 0x1f5   : > { %p584_p11 = por %p583_p6, %p582_p7 }
 0x1f7   : > { %p585_p12 = pnand %p584_p11, %p578_p5 }
 0x1f9   : > { %588 = shalt.err (!%p585_p12)
}
 0x1fa   : > { %482 = dma.vmem_to_hbm [thread:$0]  (%p837_p10), %s786_s26, 128, %s784_s29, %s352_s30  }
 0x1fb PF: > { %p493_p8 = scmp.ge.s32.totalorder %s627_s15, 2  ;;  %s377_s17 = sand.u32 1, %s615_s12  }
 0x1fc   : > { %p838_p9 = scmp.ne.s32.totalorder %s835_s25, 0  ;;  %s378_s19 = scalar_lea.sflag [#allocation4], %s377_s17 }
 0x1fe   : > { %p489_p13 = pnand %p493_p8, %p838_p9 }
 0x200   : > { %610 = dma.done.wait (!%p489_p13), %s378_s19, 128  }
 0x201   : > { %612 = vsyncadd (!%p489_p13), %s378_s19, 4294967168  ;;  %p16_p1 = scmp.ge.s32.totalorder %s681_s18, 10   ;;  %s839_s12 = smov %s619_s13 }
 0x202   : > { %s840_s13 = smov %s623_s14  ;;  %s841_s14 = smov %s693_s21 }
 0x203   : > { %s842_s15 = smov %s681_s18  ;;  %18 = sbr.rel (!%p16_p1) target bundleno = 5 (0x5), region = 77 }
 0x20a   :  { %383 = vsyncpa [#allocation3], 1 }
 0x20b   :  { %385 = vsyncpa [#allocation3 + $0x1], 1 }
 0x20c   :  { %386 = vsyncpa [#allocation4], 1 }
 0x20d   :  { %388 = vsyncpa [#allocation4 + $0x1], 1 }

</bundles_post_ra>
